<compile_context>
chip_gen: v7x
topology: tpu7x:2x2x1
jax: 0.10.0
libtpu: 0.0.40
codegen_flags: <defaults>
</compile_context>

<pallas_src>
import numpy as np
import jax
import jax.numpy as jnp
from jax.experimental import pallas as pl
from jax.experimental.pallas import tpu as pltpu


def tau_fused_kernel(tau_ref, x_ref, wt_ref, out_ref, y_sc, logn_sc):
    """Grid axis 0 = tau index.

    Shared work (the matmul and the row-norm log) is hoisted into the first
    grid step and kept in VMEM scratch.  Because that scratch is carried across
    iterations, this grid axis MUST be 'arbitrary' (not 'parallel'): sharding it
    across TensorCores would leave one core with uninitialized scratch.
    """
    i = pl.program_id(0)

    @pl.when(i == 0)
    def _():
        wt = wt_ref[...]                                      # (K, O) f32
        # Row L2 norms of the original (O, K) weight == column norms of W.T.
        sumsq = jnp.sum(wt * wt, axis=0, keepdims=True)       # (1, O)
        # Guard sumsq == 0: a zero row contributes 0 to the matmul anyway, so
        # scale = 1 keeps the output 0 and NaN-free (torch gives 0 for t=0 and
        # NaN for t>0 in this degenerate case).
        logn_sc[...] = 0.5 * jnp.log(jnp.where(sumsq > 0.0, sumsq, 1.0))
        # Single plain [B,K]x[K,O] MXU matmul: bf16 inputs, f32 accumulation.
        y_sc[...] = jax.lax.dot_general(
            x_ref[...].astype(jnp.bfloat16),
            wt.astype(jnp.bfloat16),
            dimension_numbers=(((1,), (0,)), ((), ())),
            preferred_element_type=jnp.float32,
        )

    t = tau_ref[i]                                            # scalar tau (SMEM)
    scale = jnp.exp(-t * logn_sc[...])                        # norm**(-t), (1, O)
    out_ref[...] = (y_sc[...] * scale)[None].astype(out_ref.dtype)


def tau_layer_forward(x, fc_weight, tau):
    """x: (B, K) f32, fc_weight: (O, K) f32, tau: (T,) f32 -> (B, T*O) f32."""
    B, K = x.shape
    O, _ = fc_weight.shape
    T = tau.shape[0]

    # (K, O) layout so the in-kernel dot is a plain [B,K]x[K,O] contraction
    # (no implicit RHS transpose feeding the MXU).  Pure layout plumbing.
    wt = fc_weight.T

    out_tbo = pl.pallas_call(
        tau_fused_kernel,
        out_shape=jax.ShapeDtypeStruct((T, B, O), x.dtype),
        grid_spec=pltpu.PrefetchScalarGridSpec(
            num_scalar_prefetch=1,                 # tau -> SMEM scalars
            grid=(T,),
            in_specs=[
                pl.BlockSpec((B, K), lambda i, tau_ref: (0, 0)),  # x, VMEM resident
                pl.BlockSpec((K, O), lambda i, tau_ref: (0, 0)),  # W.T, VMEM resident
            ],
            # One (B, O) output slab per tau; block's last two dims equal the
            # full array dims, so the store layout is legal and unmasked-clean.
            out_specs=pl.BlockSpec((1, B, O), lambda i, tau_ref: (i, 0, 0)),
            scratch_shapes=[
                pltpu.VMEM((B, O), jnp.float32),   # y = x @ W.T    (hoisted)
                pltpu.VMEM((1, O), jnp.float32),   # log row norms  (hoisted)
            ],
        ),
        compiler_params=pltpu.CompilerParams(
            # Scratch carries state across the tau axis -> must stay 'arbitrary'.
            dimension_semantics=("arbitrary",),
        ),
    )(tau, x, wt)

    # (T, B, O) -> (B, T*O), matching F.linear(x, cat([pnorm(W, t) for t in tau])).
    return jnp.transpose(out_tbo, (1, 0, 2)).reshape(B, T * O)


# TODO(synk): for production-scale B/K/O, tile the matmul with a (tm, tn, tk)
# grid + f32 VMEM accumulator (pl.when init/finalize) and re-derive the tile
# budget for v7x's 64 MiB VMEM; at these sizes whole-array blocks are optimal.


if __name__ == "__main__":
    key = jax.random.PRNGKey(0)
    k_w, k_x = jax.random.split(key)

    batch, in_features, out_features = 8, 32, 16
    tau_np = np.linspace(0.0, 1.0, 11).astype(np.float32)   # TauLayer default
    tau = jnp.asarray(tau_np)

    fc_weight = jax.random.normal(k_w, (out_features, in_features), jnp.float32)
    x = jax.random.normal(k_x, (batch, in_features), jnp.float32)

    fwd = jax.jit(tau_layer_forward)
    out = jax.block_until_ready(fwd(x, fc_weight, tau))
    assert out.shape == (batch, len(tau_np) * out_features)

    # --- reference checks (mirror torch pnorm + F.linear) -------------------
    row_norm = jnp.linalg.norm(fc_weight, axis=1, keepdims=True)      # (O, 1)

    # (1) Tight check of the fused algorithm: same bf16 input rounding as the
    #     kernel's MXU path, f32 products/accumulation, torch scaling formula.
    xb = x.astype(jnp.bfloat16).astype(jnp.float32)
    wb = fc_weight.astype(jnp.bfloat16).astype(jnp.float32)
    y = jnp.dot(xb, wb.T, precision=jax.lax.Precision.HIGHEST)        # (B, O)
    ref_tight = jnp.concatenate(
        [y * (row_norm.T ** (-float(t))) for t in tau_np], axis=1)
    assert jnp.allclose(out, ref_tight, rtol=1e-3, atol=1e-3), float(
        jnp.max(jnp.abs(out - ref_tight)))

    # (2) Sanity check vs the full-f32 torch-faithful reference (looser tol
    #     because the kernel feeds bf16 inputs to the MXU).
    w_ref = jnp.concatenate(
        [fc_weight / row_norm ** float(t) for t in tau_np], axis=0)
    ref_f32 = jnp.dot(x, w_ref.T, precision=jax.lax.Precision.HIGHEST)
    assert jnp.allclose(out, ref_f32, rtol=5e-2, atol=1e-1), float(
        jnp.max(jnp.abs(out - ref_f32)))

    print("KERNEL_OK")
</pallas_src>

<mosaic_0001>
module attributes {stable_mosaic.version = 11 : i64} {
  func.func @tau_fused_kernel(%arg0: i32, %arg1: memref<11xf32, #tpu.memory_space<smem>>, %arg2: memref<8x32xf32, #tpu.memory_space<vmem>>, %arg3: memref<32x16xf32, #tpu.memory_space<vmem>>, %arg4: memref<1x8x16xf32, #tpu.memory_space<vmem>>, %arg5: memref<8x16xf32, #tpu.memory_space<vmem>>, %arg6: memref<1x16xf32, #tpu.memory_space<vmem>>) attributes {dimension_semantics = [#tpu.dimension_semantics<arbitrary>], iteration_bounds = array<i64: 11>, scalar_prefetch = 1 : i64, scratch_operands = 2 : i64, tpu.core_type = #tpu.core_type<tc>, window_params = [{pipeline_mode = #tpu.pipeline_mode<synchronous>, transform_indices = @transform_0, window_bounds = array<i64: 8, 32>}, {pipeline_mode = #tpu.pipeline_mode<synchronous>, transform_indices = @transform_1, window_bounds = array<i64: 32, 16>}, {transform_indices = @transform_2, window_bounds = array<i64: 1, 8, 16>}]} {
    %c0_i32 = arith.constant 0 : i32
    %0 = arith.cmpi eq, %arg0, %c0_i32 : i32
    %1 = arith.extui %0 : i1 to i32
    %c0_i32_0 = arith.constant 0 : i32
    %2 = arith.cmpi ne, %1, %c0_i32_0 : i32
    scf.if %2 {
      %c0_7 = arith.constant 0 : index
      %c0_8 = arith.constant 0 : index
      %15 = vector.load %arg3[%c0_7, %c0_8] : memref<32x16xf32, #tpu.memory_space<vmem>>, vector<32x16xf32>
      %16 = arith.mulf %15, %15 : vector<32x16xf32>
      %cst_9 = arith.constant dense<0.000000e+00> : vector<16xf32>
      %17 = vector.multi_reduction <add>, %16, %cst_9 [0] : vector<32x16xf32> to vector<16xf32>
      %18 = vector.shape_cast %17 : vector<16xf32> to vector<1x16xf32>
      %cst_10 = arith.constant 0.000000e+00 : f32
      %19 = vector.broadcast %cst_10 : f32 to vector<1x16xf32>
      %20 = arith.cmpf ogt, %18, %19 : vector<1x16xf32>
      %cst_11 = arith.constant 1.000000e+00 : f32
      %21 = vector.broadcast %cst_11 : f32 to vector<1x16xf32>
      %22 = arith.select %20, %18, %21 : vector<1x16xi1>, vector<1x16xf32>
      %23 = math.log %22 : vector<1x16xf32>
      %cst_12 = arith.constant 5.000000e-01 : f32
      %24 = vector.broadcast %cst_12 : f32 to vector<1x16xf32>
      %25 = arith.mulf %24, %23 : vector<1x16xf32>
      %c0_13 = arith.constant 0 : index
      %c0_14 = arith.constant 0 : index
      %26 = vector.load %arg6[%c0_13, %c0_14] : memref<1x16xf32, #tpu.memory_space<vmem>>, vector<1x16xf32>
      tpu.vector_store %arg6[%c0_13, %c0_14], %25 {strides = array<i32>} : memref<1x16xf32, #tpu.memory_space<vmem>>, vector<1x16xf32>,
      %c0_15 = arith.constant 0 : index
      %c0_16 = arith.constant 0 : index
      %27 = vector.load %arg2[%c0_15, %c0_16] : memref<8x32xf32, #tpu.memory_space<vmem>>, vector<8x32xf32>
      %28 = arith.truncf %27 : vector<8x32xf32> to vector<8x32xbf16>
      %29 = arith.truncf %15 : vector<32x16xf32> to vector<32x16xbf16>
      %cst_17 = arith.constant dense<0.000000e+00> : vector<8x16xf32>
      %30 = tpu.matmul %28, %29, %cst_17 {dimension_numbers = #tpu.dot_dimension_numbers<[1], [0], [0], [1], [0, 0, 1, 1], [], []>} : vector<8x32xbf16>, vector<32x16xbf16>, vector<8x16xf32> -> vector<8x16xf32>
      %c0_18 = arith.constant 0 : index
      %c0_19 = arith.constant 0 : index
      %31 = vector.load %arg5[%c0_18, %c0_19] : memref<8x16xf32, #tpu.memory_space<vmem>>, vector<8x16xf32>
      tpu.vector_store %arg5[%c0_18, %c0_19], %30 {strides = array<i32>} : memref<8x16xf32, #tpu.memory_space<vmem>>, vector<8x16xf32>,
    } else {
    }
    %3 = arith.index_cast %arg0 : i32 to index
    %4 = memref.load %arg1[%3] : memref<11xf32, #tpu.memory_space<smem>>
    %cst = arith.constant 0.000000e+00 : f32
    %5 = arith.subf %cst, %4 : f32
    %c0 = arith.constant 0 : index
    %c0_1 = arith.constant 0 : index
    %6 = vector.load %arg6[%c0, %c0_1] : memref<1x16xf32, #tpu.memory_space<vmem>>, vector<1x16xf32>
    %7 = vector.broadcast %5 : f32 to vector<1x16xf32>
    %8 = arith.mulf %7, %6 : vector<1x16xf32>
    %9 = math.exp %8 : vector<1x16xf32>
    %c0_2 = arith.constant 0 : index
    %c0_3 = arith.constant 0 : index
    %10 = vector.load %arg5[%c0_2, %c0_3] : memref<8x16xf32, #tpu.memory_space<vmem>>, vector<8x16xf32>
    %11 = vector.broadcast %9 : vector<1x16xf32> to vector<8x16xf32>
    %12 = arith.mulf %10, %11 : vector<8x16xf32>
    %13 = vector.shape_cast %12 : vector<8x16xf32> to vector<1x8x16xf32>
    %c0_4 = arith.constant 0 : index
    %c0_5 = arith.constant 0 : index
    %c0_6 = arith.constant 0 : index
    %14 = vector.load %arg4[%c0_4, %c0_5, %c0_6] : memref<1x8x16xf32, #tpu.memory_space<vmem>>, vector<1x8x16xf32>
    tpu.vector_store %arg4[%c0_4, %c0_5, %c0_6], %13 {strides = array<i32>} : memref<1x8x16xf32, #tpu.memory_space<vmem>>, vector<1x8x16xf32>,
    return
  }
  func.func @transform_0(%arg0: i32, %arg1: memref<11xf32, #tpu.memory_space<smem>>) -> (i32, i32) {
    %c0_i32 = arith.constant 0 : i32
    %c0_i32_0 = arith.constant 0 : i32
    %c0_i32_1 = arith.constant 0 : i32
    return %c0_i32, %c0_i32_0 : i32, i32
  }
  func.func @transform_1(%arg0: i32, %arg1: memref<11xf32, #tpu.memory_space<smem>>) -> (i32, i32) {
    %c0_i32 = arith.constant 0 : i32
    %c0_i32_0 = arith.constant 0 : i32
    %c0_i32_1 = arith.constant 0 : i32
    return %c0_i32, %c0_i32_0 : i32, i32
  }
  func.func @transform_2(%arg0: i32, %arg1: memref<11xf32, #tpu.memory_space<smem>>) -> (i32, i32, i32) {
    %c0_i32 = arith.constant 0 : i32
    %c0_i32_0 = arith.constant 0 : i32
    %c0_i32_1 = arith.constant 0 : i32
    return %arg0, %c0_i32, %c0_i32_0 : i32, i32, i32
  }
}

</mosaic_0001>

<bundles_post_ra>
// kernel: tau_layer_forward.1
= control target key start
LH: loop header
LB: loop body
LE: loop exit
PB: predicated region body
PF: predicated region fallthrough
CT: control target
= control target key end

     0   :  { %s396_s0 = inlined_call_operand.vmem [shape: f32[11], index: 0, kind: input, shape index: {}]   ;;  %s397_s1 = inlined_call_operand.vmem [shape: f32[8,32], index: 1, kind: input, shape index: {}]   ;;  %s398_s2 = inlined_call_operand.vmem [shape: f32[32,16], index: 2, kind: input, shape index: {}]   ;;  %s399_s3 = inlined_call_operand.vmem [shape: f32[11,8,16], index: 3, kind: output, shape index: {}]  }
   0x1   :  { %s8_s14 = sshll.u32 %s396_s0, 4  ;;  %s9_s14 = int_to_ptr.vmem [resolvable:$true] %s8_s14 }
   0x2   :  { %s305_s15 = scalar_lea.vmem %s9_s14, 16  ;;  %p310_p1 = scmp.lt.s32.totalorder %s9_s14, %s9_s14 }
   0x3   :  { %p306_p0 = scmp.ne.s32.totalorder %s9_s14, %s305_s15  ;;  %p311_p2 = scmp.lt.s32.totalorder %s305_s15, %s305_s15 }
   0x5   :  { %p312_p3 = por %p311_p2, %p310_p1 }
   0x7   :  { %p313_p4 = pnand %p312_p3, %p306_p0 }
   0x9   :  { %316 = shalt.err (!%p313_p4)  }
   0xa   :  { %s327_s16 = smov [#allocation5]  }
   0xb   :  { %11 = dma.vmem_to_smem %s9_s14, 16, %s327_s16, [#allocation4] }
   0xc   :  { %321 = dma.done.wait [#allocation4], 16 }
   0xd   :  { %322 = vsyncadd [#allocation4], 4294967280 }
   0xe   :  { %13 = sfence }
   0xf   :  { %s353_s17 = smov 0  }
  0x10 LB: > { %s359_s0 = sadd.s32 4294967295, %s325_s17   ;;  %p273_p5 = scmp.ge.s32.totalorder %s325_s17, 1  ;;  %s325_s17 = sphi %s353_s17, %s19_s17  }
  0x11   : > { %p109_p6 = scmp.lt.s32.totalorder %s325_s17, 12 }
  0x13   : > { %p110_p7 = pnand %p273_p5, %p109_p6 }
  0x14   : > { %p125_p8 = scmp.lt.s32.totalorder (!%p110_p7), %s359_s0, 10  ;;  %p275_p9 = scmp.ne.s32.totalorder (!%p110_p7), %s359_s0, 0 }
  0x15   : > { %113 = sbr.rel (%p110_p7) target bundleno = 283 (0x11b), region = 28 }
  0x1c   : > { %s126_s18 = scalar_select %p125_p8, %s359_s0, 10 }
  0x1d   : > { %133 = sbr.rel (%p275_p9) target bundleno = 254 (0xfe), region = 32  ;;  %v134_v0 = vld [vmem:[%s398_s2] sm:$0xff] (!%p275_p9)  ;;  %v135_v1 = vld [vmem:[%s398_s2 + $0x8] sm:$0xff] (!%p275_p9)  ;;  %vm142_vm0 = vcmask (!%p275_p9), 130048   ;;  %v136_v2 = vld [vmem:[%s398_s2 + $0x10] sm:$0xff] (!%p275_p9)  ;;  %v328_v3 = vmov (!%p275_p9), 0.0  }
  0x1e   : > { %s274_s19 = sshll.u32 %s126_s18, 3  ;;  %282 = vmatprep.subr.bf16.mxu0 (!%p275_p9), %v328_v3  ;;  %v138_v4 = vmul.f32 (!%p275_p9), %v134_v0, %v134_v0  ;;  %v139_v5 = vmul.f32 (!%p275_p9), %v135_v1, %v135_v1  ;;  %v165_v6 = vpack.c.bf16 (!%p275_p9), %v135_v1, %v134_v0  ;;  %v137_v7 = vld [vmem:[%s398_s2 + $0x18] sm:$0xff] (!%p275_p9)  ;;  %v140_v8 = vmul.f32 (!%p275_p9), %v136_v2, %v136_v2  ;;  %v163_v14 = vld [vmem:[%s397_s1] sm:$0xff] (!%p275_p9) }
  0x1f   : > { %s368_s22 = scalar_lea.vmem %s399_s3, %s274_s19  ;;  %v141_v9 = vmul.f32 (!%p275_p9), %v137_v7, %v137_v7  ;;  %v166_v13 = vpack.c.bf16 (!%p275_p9), %v137_v7, %v136_v2  ;;  %vm329_vm1 = vmmov (!%p275_p9), 0   ;;  %v164_v18 = vpack.c.bf16 (!%p275_p9), %v163_v14, %v163_v14 }
  0x20   : > { %v143_v10 = vsel (!%p275_p9), %vm142_vm0, %v138_v4, 0.0  ;;  %v144_v11 = vsel (!%p275_p9), %vm142_vm0, %v139_v5, 0.0  ;;  %283 = vmatpush3.bf16.msra.mxu0 (!%p275_p9), %v165_v6  ;;  %v146_v12 = vsel (!%p275_p9), %vm142_vm0, %v140_v8, 0.0  ;;  %286 = vmatprep.mubr.msk.bf16.mxu0 (!%p275_p9), %vm329_vm1, %v328_v3  ;;  %vm167_vm2 = vcmask (!%p275_p9), 261120  }
  0x21   : > { %v145_v15 = vadd.f32 (!%p275_p9), %v144_v11, %v143_v10  ;;  %284 = vmatprep.subr.bf16.mxu0 (!%p275_p9), %v328_v3  ;;  %v148_v16 = vsel (!%p275_p9), %vm142_vm0, %v141_v9, 0.0  ;;  %vm161_vm4 = vcmask (!%p275_p9), 122880  }
  0x23   : > { %v147_v17 = vadd.f32 (!%p275_p9), %v146_v12, %v145_v15 }
  0x24   : > { %285 = vmatpush3.bf16.msra.mxu0 %v166_v13 }
  0x25   : > { %v149_v19 = vadd.f32 %v148_v16, %v147_v17 }
  0x27   : > { %v150_v20 = vrot.slane %v149_v19, 4  ;;  %287 = vmatmul.mubr.msk.bf16.vlgmr.msra.gmra.mrb[0].mxu0 %vm167_vm2, %v164_v18 }
  0x29   : > { %v151_v21 = vadd.f32 %v150_v20, %v149_v19 }
  0x2b   : > { %v152_v22 = vrot.slane %v151_v21, 2 }
  0x2d   : > { %v153_v23 = vadd.f32 %v152_v22, %v151_v21 }
  0x2f   : > { %v154_v24 = vrot.slane %v153_v23, 1 }
  0x31   : > { %v155_v25 = vadd.f32 %v154_v24, %v153_v23 }
  0x33   : > { %vm156_vm3 = vcmp.gt.f32.partialorder %v155_v25, 0.0 }
  0x34   : > { %v157_v26 = vsel %vm156_vm3, %v155_v25, 1.0 }
  0x35   : > { %301 = vlog2.f32 %v157_v26 }
  0x3f   : > { %v302_v27 = vpop.eup %301 }
  0x40   : > { %v159_v28 = vmul.f32 0.6931472, %v302_v27 }
  0x42   : > { %v160_v29 = vmul.f32 0.5, %v159_v28 }
  0x44   : > { %162 = vst.msk [vmem:[#allocation3] sm:$0x1] %vm161_vm4, %v160_v29 }
  0xfa   : > { %v205_v30 = vpop.f32.mrb[0].mxu0 }
  0xfb   : > { %211 = vst.msk [vmem:[#allocation2] sm:$0xff] %vm142_vm0, %v205_v30  ;;  %v288_v31 = vpop.f32.mrb[1].mxu0 }
  0xfc   : > { %v208_v32 = vpop.f32.mrb[2].mxu0 }
  0xfd   : > { %v289_v33 = vpop.f32.mrb[3].mxu0 }
  0xfe PF: > { %s212_s6 = sld [smem:[#allocation5 + %s359_s0]]  ;;  %v214_v34 = vld [vmem:[#allocation3] sm:$0x1]  ;;  %v221_v38 = vlaneseq  ;;  %vm227_vm5 = vcmask 130048  }
 0x100   : > { %v222_v39 = vshrl.u32 %v221_v38, 7 }
 0x102   : > { %v223_v40 = vsub.s32 0, %v222_v39  ;;  %v219_v42 = vld [vmem:[#allocation2] sm:$0xff] }
 0x104   : > { %s213_s7 = ssub.f32 0.0, %s212_s6 }
 0x106   : > { %v215_v35 = vstv %s213_s7 }
 0x107   : > { %v216_v36 = vmul.f32 %v215_v35, %v214_v34 }
 0x109   : > { %v217_v37 = vmul.f32 1.442695, %v216_v36 }
 0x10b   : > { %303 = vpow2.f32 %v217_v37 }
 0x115   : > { %v304_v41 = vpop.eup %303 }
 0x116   : > { %v224_v43 = vrot.slane %v304_v41, %v223_v40 }
 0x118   : > { %v226_v44 = vmul.f32 %v224_v43, %v219_v42 }
 0x11a   : > { %228 = vst.msk [vmem:[%s368_s22] sm:$0xff] %vm227_vm5, %v226_v44 }
 0x11b PF: > { %s19_s17 = sadd.s32 1, %s325_s17  }
 0x11c   : > { %p16_p10 = scmp.ge.s32.totalorder %s19_s17, 13  }
 0x11e   :  { %18 = sbr.rel (!%p16_p10) target bundleno = 16 (0x10), region = 59 }

</bundles_post_ra>
